<compile_context>
chip_gen: v5e
topology: v5e:2x2
jax: 0.10.0
libtpu: 0.0.40
codegen_flags: <defaults>
</compile_context>

<pallas_src>
import functools

import jax
import jax.numpy as jnp
from jax.experimental import pallas as pl
from jax.experimental.pallas import tpu as pltpu

STATE_SIZE = 8
HIDDEN_SIZE = 256
ACTION_SIZE = 2
HEAD_PAD = 128          # fused-head output width (lane-dense, >= ACTION_SIZE + 1)
LN_EPS = 1e-5           # PyTorch nn.LayerNorm default


def _round_up(x, m):
    return (x + m - 1) // m * m


def _layernorm(h, gamma, beta):
    """Single-pass LayerNorm: var = E[h^2] - mu^2, one rsqrt, no (h-mu) reuse."""
    mu = jnp.mean(h, axis=-1, keepdims=True)
    var = jnp.mean(h * h, axis=-1, keepdims=True) - mu * mu
    inv = jax.lax.rsqrt(var + LN_EPS)
    return ((h - mu) * inv) * gamma + beta


def actor_critic_kernel(x_ref, w1_ref, w2_ref, wh_ref, vecs_ref, out_ref):
    # vecs_ref is an (8, H) f32 slab:
    #   rows 0..2 = b1, gamma1, beta1 ; rows 3..5 = b2, gamma2, beta2
    #   row 6, cols [:HEAD_PAD] = fused head bias (zero padded) ; row 7 unused.
    vecs = vecs_ref[...]                       # one clean (8, H) load, slice in regs
    b1, g1, be1 = vecs[0:1], vecs[1:2], vecs[2:3]
    b2, g2, be2 = vecs[3:4], vecs[4:5], vecs[5:6]
    bh = vecs[6:7, :HEAD_PAD]

    # ---- encoder layer 1: Linear -> LayerNorm -> ReLU (bf16 MXU, f32 accumulate) ----
    h = jnp.dot(x_ref[...], w1_ref[...], preferred_element_type=jnp.float32) + b1
    h = jnp.maximum(_layernorm(h, g1, be1), 0.0)

    # ---- encoder layer 2 ----
    h2 = jnp.dot(h.astype(w2_ref.dtype), w2_ref[...],
                 preferred_element_type=jnp.float32) + b2
    h2 = jnp.maximum(_layernorm(h2, g2, be2), 0.0)

    # ---- fused actor + critic head: single lane-dense (tile_b, HEAD_PAD) output ----
    out_ref[...] = (
        jnp.dot(h2.astype(wh_ref.dtype), wh_ref[...],
                preferred_element_type=jnp.float32) + bh
    ).astype(out_ref.dtype)


@functools.partial(jax.jit, static_argnames=("tile_b", "use_bf16"))
def actor_critic_forward(x, params, *, tile_b=128, use_bf16=True):
    """Returns (logits (B, A), value (B, 1)).

    tile_b: max batch tile (rounded to a multiple of 16 for bf16 sublane packing).
            128 fills the v5e MXU M-dim; the kernel is VPU-bound so larger tiles
            mostly add register pressure. When the padded batch is >= 32 the tile is
            capped so the grid has >= 2 steps (v7x megacore sharding).
    """
    B, S = x.shape
    assert S == STATE_SIZE
    H, A = HIDDEN_SIZE, ACTION_SIZE
    mat_dtype = jnp.bfloat16 if use_bf16 else jnp.float32

    # --- fuse actor & critic into one (H, HEAD_PAD) zero-padded weight ---
    wh = jnp.zeros((H, HEAD_PAD), jnp.float32)
    wh = wh.at[:, :A].set(params["wa"]).at[:, A:A + 1].set(params["wc"])

    # --- pack all per-feature vectors into one (8, H) slab ---
    vecs = jnp.zeros((8, H), jnp.float32)
    vecs = vecs.at[0].set(params["b1"][0]).at[1].set(params["g1"][0]).at[2].set(params["be1"][0])
    vecs = vecs.at[3].set(params["b2"][0]).at[4].set(params["g2"][0]).at[5].set(params["be2"][0])
    vecs = vecs.at[6, :A].set(params["ba"][0]).at[6, A].set(params["bc"][0, 0])

    w1 = params["w1"].astype(mat_dtype)
    w2 = params["w2"].astype(mat_dtype)
    wh = wh.astype(mat_dtype)
    xq = x.astype(mat_dtype)

    # --- batch tiling: 16-row granularity (bf16 sublane packing), >= 2 grid steps
    #     whenever possible so ("parallel",) shards across v7x's two TensorCores ---
    tile_b = max(16, tile_b - tile_b % 16)
    b16 = _round_up(B, 16)
    tb = min(tile_b, b16)
    if b16 >= 32:
        tb = min(tb, _round_up(b16 // 2, 16))
    B_pad = _round_up(B, tb)
    if B_pad != B:
        # Padded rows are zero; LayerNorm on them stays finite because LN_EPS > 0,
        # and they are sliced off below.
        xq = jnp.pad(xq, ((0, B_pad - B), (0, 0)))

    full = lambda shape: pl.BlockSpec(shape, lambda i: (0,) * len(shape))

    grid_spec = pltpu.PrefetchScalarGridSpec(
        num_scalar_prefetch=0,
        grid=(B_pad // tb,),
        in_specs=[
            pl.BlockSpec((tb, S), lambda i: (i, 0)),        # x tile over batch
            full((S, H)),                                   # W1 (constant block -> resident)
            full((H, H)),                                   # W2
            full((H, HEAD_PAD)),                            # fused head weight
            full((8, H)),                                   # packed bias/gamma/beta slab
        ],
        out_specs=pl.BlockSpec((tb, HEAD_PAD), lambda i: (i, 0)),
    )

    head = pl.pallas_call(
        actor_critic_kernel,
        out_shape=jax.ShapeDtypeStruct((B_pad, HEAD_PAD), jnp.float32),
        grid_spec=grid_spec,
        compiler_params=pltpu.CompilerParams(
            dimension_semantics=("parallel",),  # shards grid steps across v7x TCs
        ),
    )(xq, w1, w2, wh, vecs)

    head = head[:B]
    return head[:, :A], head[:, A:A + 1]


def init_params(key):
    """Deterministic synthetic parameters (shapes match the PyTorch module)."""
    ks = jax.random.split(key, 8)
    H, S, A = HIDDEN_SIZE, STATE_SIZE, ACTION_SIZE

    def lin(kw, kb, fan_in, fan_out):
        bound = 1.0 / jnp.sqrt(fan_in)
        w = jax.random.uniform(kw, (fan_in, fan_out), jnp.float32, -bound, bound)
        b = jax.random.uniform(kb, (1, fan_out), jnp.float32, -bound, bound)
        return w, b

    w1, b1 = lin(ks[0], ks[1], S, H)
    w2, b2 = lin(ks[2], ks[3], H, H)
    wa, ba = lin(ks[4], ks[5], H, A)
    wc, bc = lin(ks[6], ks[7], H, 1)

    return dict(
        w1=w1, b1=b1, g1=jnp.ones((1, H), jnp.float32), be1=jnp.zeros((1, H), jnp.float32),
        w2=w2, b2=b2, g2=jnp.ones((1, H), jnp.float32), be2=jnp.zeros((1, H), jnp.float32),
        wa=wa, ba=ba, wc=wc, bc=bc,
    )


def reference_forward(x, p, use_bf16=True):
    """Pure-JAX reference mirroring the kernel's bf16 MXU-operand quantization."""
    q = (lambda a: a.astype(jnp.bfloat16).astype(jnp.float32)) if use_bf16 else (lambda a: a)

    def ln(h, g, b):
        mu = jnp.mean(h, axis=-1, keepdims=True)
        var = jnp.mean(h * h, axis=-1, keepdims=True) - mu * mu
        return (h - mu) / jnp.sqrt(var + LN_EPS) * g + b

    h = jnp.maximum(ln(q(x) @ q(p["w1"]) + p["b1"], p["g1"], p["be1"]), 0.0)
    h2 = jnp.maximum(ln(q(h) @ q(p["w2"]) + p["b2"], p["g2"], p["be2"]), 0.0)
    logits = q(h2) @ q(p["wa"]) + p["ba"]
    value = q(h2) @ q(p["wc"]) + p["bc"]
    return logits, value


if __name__ == "__main__":
    # TODO(synk): get_action() (Categorical sampling / log_prob) is host-side control
    # logic in the PyTorch module and is not implemented as a kernel; only forward() is.
    key = jax.random.PRNGKey(0)
    k_x, k_p = jax.random.split(key)

    batch = 32  # small batch of states, each of size state_size=8 -> 2 grid steps of 16
    x = jax.random.normal(k_x, (batch, STATE_SIZE), jnp.float32)
    params = init_params(k_p)

    logits, value = actor_critic_forward(x, params)
    jax.block_until_ready((logits, value))

    ref_logits, ref_value = reference_forward(x, params)
    assert logits.shape == (batch, ACTION_SIZE) and value.shape == (batch, 1)
    assert jnp.allclose(logits, ref_logits, atol=1e-3, rtol=1e-3)
    assert jnp.allclose(value, ref_value, atol=1e-3, rtol=1e-3)

    print("KERNEL_OK")
</pallas_src>

<mosaic_0001>
module attributes {stable_mosaic.version = 11 : i64} {
  func.func @actor_critic_kernel(%arg0: i32, %arg1: memref<16x8xbf16, #tpu.memory_space<vmem>>, %arg2: memref<8x256xbf16, #tpu.memory_space<vmem>>, %arg3: memref<256x256xbf16, #tpu.memory_space<vmem>>, %arg4: memref<256x128xbf16, #tpu.memory_space<vmem>>, %arg5: memref<8x256xf32, #tpu.memory_space<vmem>>, %arg6: memref<16x128xf32, #tpu.memory_space<vmem>>) attributes {dimension_semantics = [#tpu.dimension_semantics<parallel>], iteration_bounds = array<i64: 2>, scalar_prefetch = 0 : i64, scratch_operands = 0 : i64, tpu.core_type = #tpu.core_type<tc>, window_params = [{transform_indices = @transform_0, window_bounds = array<i64: 16, 8>}, {pipeline_mode = #tpu.pipeline_mode<synchronous>, transform_indices = @transform_1, window_bounds = array<i64: 8, 256>}, {pipeline_mode = #tpu.pipeline_mode<synchronous>, transform_indices = @transform_2, window_bounds = array<i64: 256, 256>}, {pipeline_mode = #tpu.pipeline_mode<synchronous>, transform_indices = @transform_3, window_bounds = array<i64: 256, 128>}, {pipeline_mode = #tpu.pipeline_mode<synchronous>, transform_indices = @transform_4, window_bounds = array<i64: 8, 256>}, {transform_indices = @transform_5, window_bounds = array<i64: 16, 128>}]} {
    %c0 = arith.constant 0 : index
    %c0_0 = arith.constant 0 : index
    %0 = vector.load %arg5[%c0, %c0_0] : memref<8x256xf32, #tpu.memory_space<vmem>>, vector<8x256xf32>
    %1 = vector.extract_strided_slice %0 {offsets = [0, 0], sizes = [1, 256], strides = [1, 1]} : vector<8x256xf32> to vector<1x256xf32>
    %2 = vector.extract_strided_slice %0 {offsets = [1, 0], sizes = [1, 256], strides = [1, 1]} : vector<8x256xf32> to vector<1x256xf32>
    %3 = vector.extract_strided_slice %0 {offsets = [2, 0], sizes = [1, 256], strides = [1, 1]} : vector<8x256xf32> to vector<1x256xf32>
    %4 = vector.extract_strided_slice %0 {offsets = [3, 0], sizes = [1, 256], strides = [1, 1]} : vector<8x256xf32> to vector<1x256xf32>
    %5 = vector.extract_strided_slice %0 {offsets = [4, 0], sizes = [1, 256], strides = [1, 1]} : vector<8x256xf32> to vector<1x256xf32>
    %6 = vector.extract_strided_slice %0 {offsets = [5, 0], sizes = [1, 256], strides = [1, 1]} : vector<8x256xf32> to vector<1x256xf32>
    %7 = vector.extract_strided_slice %0 {offsets = [6, 0], sizes = [1, 128], strides = [1, 1]} : vector<8x256xf32> to vector<1x128xf32>
    %c0_1 = arith.constant 0 : index
    %c0_2 = arith.constant 0 : index
    %8 = vector.load %arg1[%c0_1, %c0_2] : memref<16x8xbf16, #tpu.memory_space<vmem>>, vector<16x8xbf16>
    %c0_3 = arith.constant 0 : index
    %c0_4 = arith.constant 0 : index
    %9 = vector.load %arg2[%c0_3, %c0_4] : memref<8x256xbf16, #tpu.memory_space<vmem>>, vector<8x256xbf16>
    %cst = arith.constant dense<0.000000e+00> : vector<16x256xf32>
    %10 = tpu.matmul %8, %9, %cst {dimension_numbers = #tpu.dot_dimension_numbers<[1], [0], [0], [1], [0, 0, 1, 1], [], []>} : vector<16x8xbf16>, vector<8x256xbf16>, vector<16x256xf32> -> vector<16x256xf32>
    %11 = vector.broadcast %1 : vector<1x256xf32> to vector<16x256xf32>
    %12 = arith.addf %10, %11 : vector<16x256xf32>
    %cst_5 = arith.constant dense<0.000000e+00> : vector<16xf32>
    %13 = vector.multi_reduction <add>, %12, %cst_5 [1] : vector<16x256xf32> to vector<16xf32>
    %14 = vector.shape_cast %13 : vector<16xf32> to vector<16x1xf32>
    %cst_6 = arith.constant 2.560000e+02 : f32
    %15 = vector.broadcast %cst_6 : f32 to vector<16x1xf32>
    %16 = arith.divf %14, %15 : vector<16x1xf32>
    %17 = arith.mulf %12, %12 : vector<16x256xf32>
    %cst_7 = arith.constant dense<0.000000e+00> : vector<16xf32>
    %18 = vector.multi_reduction <add>, %17, %cst_7 [1] : vector<16x256xf32> to vector<16xf32>
    %19 = vector.shape_cast %18 : vector<16xf32> to vector<16x1xf32>
    %cst_8 = arith.constant 2.560000e+02 : f32
    %20 = vector.broadcast %cst_8 : f32 to vector<16x1xf32>
    %21 = arith.divf %19, %20 : vector<16x1xf32>
    %22 = arith.mulf %16, %16 : vector<16x1xf32>
    %23 = arith.subf %21, %22 : vector<16x1xf32>
    %cst_9 = arith.constant 9.99999974E-6 : f32
    %24 = vector.broadcast %cst_9 : f32 to vector<16x1xf32>
    %25 = arith.addf %23, %24 : vector<16x1xf32>
    %26 = math.rsqrt %25 : vector<16x1xf32>
    %27 = vector.broadcast %16 : vector<16x1xf32> to vector<16x256xf32>
    %28 = arith.subf %12, %27 : vector<16x256xf32>
    %29 = vector.broadcast %26 : vector<16x1xf32> to vector<16x256xf32>
    %30 = arith.mulf %28, %29 : vector<16x256xf32>
    %31 = vector.broadcast %2 : vector<1x256xf32> to vector<16x256xf32>
    %32 = arith.mulf %30, %31 : vector<16x256xf32>
    %33 = vector.broadcast %3 : vector<1x256xf32> to vector<16x256xf32>
    %34 = arith.addf %32, %33 : vector<16x256xf32>
    %cst_10 = arith.constant 0.000000e+00 : f32
    %35 = vector.broadcast %cst_10 : f32 to vector<16x256xf32>
    %36 = arith.maximumf %34, %35 : vector<16x256xf32>
    %37 = arith.truncf %36 : vector<16x256xf32> to vector<16x256xbf16>
    %c0_11 = arith.constant 0 : index
    %c0_12 = arith.constant 0 : index
    %38 = vector.load %arg3[%c0_11, %c0_12] : memref<256x256xbf16, #tpu.memory_space<vmem>>, vector<256x256xbf16>
    %cst_13 = arith.constant dense<0.000000e+00> : vector<16x256xf32>
    %39 = tpu.matmul %37, %38, %cst_13 {dimension_numbers = #tpu.dot_dimension_numbers<[1], [0], [0], [1], [0, 0, 1, 1], [], []>} : vector<16x256xbf16>, vector<256x256xbf16>, vector<16x256xf32> -> vector<16x256xf32>
    %40 = vector.broadcast %4 : vector<1x256xf32> to vector<16x256xf32>
    %41 = arith.addf %39, %40 : vector<16x256xf32>
    %cst_14 = arith.constant dense<0.000000e+00> : vector<16xf32>
    %42 = vector.multi_reduction <add>, %41, %cst_14 [1] : vector<16x256xf32> to vector<16xf32>
    %43 = vector.shape_cast %42 : vector<16xf32> to vector<16x1xf32>
    %cst_15 = arith.constant 2.560000e+02 : f32
    %44 = vector.broadcast %cst_15 : f32 to vector<16x1xf32>
    %45 = arith.divf %43, %44 : vector<16x1xf32>
    %46 = arith.mulf %41, %41 : vector<16x256xf32>
    %cst_16 = arith.constant dense<0.000000e+00> : vector<16xf32>
    %47 = vector.multi_reduction <add>, %46, %cst_16 [1] : vector<16x256xf32> to vector<16xf32>
    %48 = vector.shape_cast %47 : vector<16xf32> to vector<16x1xf32>
    %cst_17 = arith.constant 2.560000e+02 : f32
    %49 = vector.broadcast %cst_17 : f32 to vector<16x1xf32>
    %50 = arith.divf %48, %49 : vector<16x1xf32>
    %51 = arith.mulf %45, %45 : vector<16x1xf32>
    %52 = arith.subf %50, %51 : vector<16x1xf32>
    %cst_18 = arith.constant 9.99999974E-6 : f32
    %53 = vector.broadcast %cst_18 : f32 to vector<16x1xf32>
    %54 = arith.addf %52, %53 : vector<16x1xf32>
    %55 = math.rsqrt %54 : vector<16x1xf32>
    %56 = vector.broadcast %45 : vector<16x1xf32> to vector<16x256xf32>
    %57 = arith.subf %41, %56 : vector<16x256xf32>
    %58 = vector.broadcast %55 : vector<16x1xf32> to vector<16x256xf32>
    %59 = arith.mulf %57, %58 : vector<16x256xf32>
    %60 = vector.broadcast %5 : vector<1x256xf32> to vector<16x256xf32>
    %61 = arith.mulf %59, %60 : vector<16x256xf32>
    %62 = vector.broadcast %6 : vector<1x256xf32> to vector<16x256xf32>
    %63 = arith.addf %61, %62 : vector<16x256xf32>
    %cst_19 = arith.constant 0.000000e+00 : f32
    %64 = vector.broadcast %cst_19 : f32 to vector<16x256xf32>
    %65 = arith.maximumf %63, %64 : vector<16x256xf32>
    %66 = arith.truncf %65 : vector<16x256xf32> to vector<16x256xbf16>
    %c0_20 = arith.constant 0 : index
    %c0_21 = arith.constant 0 : index
    %67 = vector.load %arg4[%c0_20, %c0_21] : memref<256x128xbf16, #tpu.memory_space<vmem>>, vector<256x128xbf16>
    %cst_22 = arith.constant dense<0.000000e+00> : vector<16x128xf32>
    %68 = tpu.matmul %66, %67, %cst_22 {dimension_numbers = #tpu.dot_dimension_numbers<[1], [0], [0], [1], [0, 0, 1, 1], [], []>} : vector<16x256xbf16>, vector<256x128xbf16>, vector<16x128xf32> -> vector<16x128xf32>
    %69 = vector.broadcast %7 : vector<1x128xf32> to vector<16x128xf32>
    %70 = arith.addf %68, %69 : vector<16x128xf32>
    %c0_23 = arith.constant 0 : index
    %c0_24 = arith.constant 0 : index
    %71 = vector.load %arg6[%c0_23, %c0_24] : memref<16x128xf32, #tpu.memory_space<vmem>>, vector<16x128xf32>
    tpu.vector_store %arg6[%c0_23, %c0_24], %70 {strides = array<i32>} : memref<16x128xf32, #tpu.memory_space<vmem>>, vector<16x128xf32>,
    return
  }
  func.func @transform_0(%arg0: i32) -> (i32, i32) {
    %c0_i32 = arith.constant 0 : i32
    %c0_i32_0 = arith.constant 0 : i32
    return %arg0, %c0_i32 : i32, i32
  }
  func.func @transform_1(%arg0: i32) -> (i32, i32) {
    %c0_i32 = arith.constant 0 : i32
    %c0_i32_0 = arith.constant 0 : i32
    %c0_i32_1 = arith.constant 0 : i32
    return %c0_i32, %c0_i32_0 : i32, i32
  }
  func.func @transform_2(%arg0: i32) -> (i32, i32) {
    %c0_i32 = arith.constant 0 : i32
    %c0_i32_0 = arith.constant 0 : i32
    %c0_i32_1 = arith.constant 0 : i32
    return %c0_i32, %c0_i32_0 : i32, i32
  }
  func.func @transform_3(%arg0: i32) -> (i32, i32) {
    %c0_i32 = arith.constant 0 : i32
    %c0_i32_0 = arith.constant 0 : i32
    %c0_i32_1 = arith.constant 0 : i32
    return %c0_i32, %c0_i32_0 : i32, i32
  }
  func.func @transform_4(%arg0: i32) -> (i32, i32) {
    %c0_i32 = arith.constant 0 : i32
    %c0_i32_0 = arith.constant 0 : i32
    %c0_i32_1 = arith.constant 0 : i32
    return %c0_i32, %c0_i32_0 : i32, i32
  }
  func.func @transform_5(%arg0: i32) -> (i32, i32) {
    %c0_i32 = arith.constant 0 : i32
    %c0_i32_0 = arith.constant 0 : i32
    return %arg0, %c0_i32 : i32, i32
  }
}

</mosaic_0001>

<bundles_post_ra>
// kernel: actor_critic_forward.1
= control target key start
LH: loop header
LB: loop body
LE: loop exit
PB: predicated region body
PF: predicated region fallthrough
CT: control target
= control target key end

     0   :  { %s1217_s18 = smov 0   ;;  %s1575_s0 = inlined_call_operand.vmem [shape: bf16[32,8], index: 0, kind: input, shape index: {}]   ;;  %s1576_s1 = inlined_call_operand.vmem [shape: bf16[8,256], index: 1, kind: input, shape index: {}]   ;;  %s1577_s2 = inlined_call_operand.vmem [shape: bf16[256,256], index: 2, kind: input, shape index: {}]   ;;  %s1578_s3 = inlined_call_operand.vmem [shape: bf16[256,128], index: 3, kind: input, shape index: {}]   ;;  %s1579_s4 = inlined_call_operand.vmem [shape: f32[8,256], index: 4, kind: input, shape index: {}]   ;;  %s1580_s5 = inlined_call_operand.vmem [shape: f32[32,128], index: 5, kind: output, shape index: {}]  }
   0x1 LB: > { %s901_s19 = sadd.s32 4294967295, %s1184_s18   ;;  %p905_p0 = scmp.ge.s32.totalorder %s1184_s18, 1  ;;  %s1184_s18 = sphi %s1217_s18, %s15_s18  }
   0x2   : > { %p188_p1 = scmp.lt.s32.totalorder %s1184_s18, 3 }
   0x4   : > { %p189_p2 = pnand %p905_p0, %p188_p1 }
   0x5   : > { %s906_s22 = sshll.u32 (!%p189_p2), %s901_s19, 1 }
   0x6   : > { %192 = sbr.rel (%p189_p2) target bundleno = 753 (0x2f1), region = 40  ;;  %p217_p3 = scmp.lt.s32.totalorder (!%p189_p2), %s906_s22, 3 }
   0xb   : > { %v233_v0 = vld [vmem:[%s1576_s1] sm:$0xff]  ;;  %vm250_vm0 = vcmask 1043456   ;;  %s1582_s22 = smov (!%p217_p3, %s906_s22), 3  ;;  %vm246_vm1 = vcmask 64512   ;;  %v1242_v9 = vld [vmem:[%s1579_s4 + $0x8] sm:$0xff]  ;;  %v1186_v28 = vmov 256.0  }
   0xc   : > { %v242_v1 = vunpack.c.l.b16 %v233_v0  ;;  %v243_v2 = vunpack.c.h.b16 %v233_v0  ;;  %s907_s23 = sshll.u32 %s1582_s22, 2  ;;  %v1237_v8 = vld [vmem:[%s1579_s4] sm:$0xff]  ;;  %v235_v11 = vperm.slane %v1242_v9, 0  ;;  %1168 = vrcp.f32 %v1186_v28  ;;  %v974_v30 = vld [vmem:[%s1577_s2 + $0x70] sm:$0xf]  ;;  %s909_s30 = sshll.u32 %s1582_s22, 3 }
   0xd   : > { %s220_s26 = scalar_lea.vmem %s1575_s0, %s907_s23  ;;  %v234_v10 = vperm.slane %v1237_v8, 0  ;;  %v1126_v31 = vld [vmem:[%s1577_s2 + $0x74] sm:$0xf0]  ;;  %v1038_v32 = vld [vmem:[%s1577_s2 + $0xf0] sm:$0xf]  ;;  %s226_s8 = scalar_lea.vmem %s1580_s5, %s909_s30 }
   0xe   : > { %v244_v3 = vpack.c.b16 %v242_v1, %v242_v1  ;;  %v245_v4 = vpack.c.b16 %v243_v2, %v243_v2  ;;  %v1110_v7 = vld [vmem:[%s220_s26] sm:$0xff]  ;;  %v975_v33 = vor.u32 %v1126_v31, %v974_v30  ;;  %v1142_v34 = vld [vmem:[%s1577_s2 + $0xf4] sm:$0xf0]  ;;  %v1125_v35 = vld [vmem:[%s1577_s2 + $0x74] sm:$0xf] }
   0xf   : > { %v976_v36 = vld [vmem:[%s1577_s2 + $0x78] sm:$0xf0]  ;;  %v1039_v37 = vor.u32 %v1142_v34, %v1038_v32  ;;  %v1141_v39 = vld [vmem:[%s1577_s2 + $0xf4] sm:$0xf]  ;;  %v966_v43 = vld [vmem:[%s1577_s2 + $0x60] sm:$0xf] }
  0x10   : > { %v252_v5 = vsel %vm250_vm0, %v244_v3, 0  ;;  %v255_v6 = vsel %vm250_vm0, %v245_v4, 0  ;;  %v979_v38 = vor.u32 %v1125_v35, %v976_v36  ;;  %v1040_v40 = vld [vmem:[%s1577_s2 + $0xf8] sm:$0xf0]  ;;  %558 = vmatpush.bf16.msra.mxu2 %v975_v33  ;;  %v1124_v44 = vld [vmem:[%s1577_s2 + $0x64] sm:$0xf0] }
  0x11   : > { %264 = vmatpush.bf16.msra.mxu0 %v252_v5  ;;  %278 = vmatpush.bf16.msra.mxu1 %v255_v6  ;;  %v1043_v42 = vor.u32 %v1141_v39, %v1040_v40  ;;  %v1030_v45 = vld [vmem:[%s1577_s2 + $0xe0] sm:$0xf]  ;;  %v967_v46 = vor.u32 %v1124_v44, %v966_v43  ;;  %v1140_v47 = vld [vmem:[%s1577_s2 + $0xe4] sm:$0xf0]  ;;  %v1123_v48 = vld [vmem:[%s1577_s2 + $0x64] sm:$0xf] }
  0x12   : > { %v1266_v29 = vpop.eup %1168  ;;  %572 = vmatpush.bf16.msra.mxu3 %v1039_v37  ;;  %v968_v49 = vld [vmem:[%s1577_s2 + $0x68] sm:$0xf0]  ;;  %v1031_v50 = vor.u32 %v1140_v47, %v1030_v45  ;;  %v1139_v52 = vld [vmem:[%s1577_s2 + $0xe4] sm:$0xf]  ;;  %v958_v56 = vld [vmem:[%s1577_s2 + $0x50] sm:$0xf] }
  0x13   : > { %v292_v41 = vmul.f32 256.0, %v1266_v29  ;;  %v971_v51 = vor.u32 %v1123_v48, %v968_v49  ;;  %v1032_v53 = vld [vmem:[%s1577_s2 + $0xe8] sm:$0xf0]  ;;  %v1122_v57 = vld [vmem:[%s1577_s2 + $0x54] sm:$0xf0]  ;;  %vm296_vm2 = vweird.f32 %v1266_v29 }
  0x14   : > { %914 = vmatmul.msk.bf16.vlgmr.msra.gmra.mxu0 %vm246_vm1, %v1110_v7  ;;  %915 = vmatmul.msk.bf16.vlgmr.msra.gmra.mxu1 %vm246_vm1, %v1110_v7  ;;  %v1035_v55 = vor.u32 %v1139_v52, %v1032_v53  ;;  %v1022_v58 = vld [vmem:[%s1577_s2 + $0xd0] sm:$0xf]  ;;  %v959_v59 = vor.u32 %v1122_v57, %v958_v56  ;;  %v1138_v60 = vld [vmem:[%s1577_s2 + $0xd4] sm:$0xf0]  ;;  %v1121_v61 = vld [vmem:[%s1577_s2 + $0x54] sm:$0xf] }
  0x15   : > { %586 = vmatpush.bf16.msrb.mxu0 %v979_v38  ;;  %600 = vmatpush.bf16.msrb.mxu1 %v1043_v42  ;;  %v293_v54 = vsub.f32 1.0, %v292_v41  ;;  %v960_v62 = vld [vmem:[%s1577_s2 + $0x58] sm:$0xf0]  ;;  %v1023_v63 = vor.u32 %v1138_v60, %v1022_v58  ;;  %v1137_v1 = vld [vmem:[%s1577_s2 + $0xd4] sm:$0xf] }
  0x16   : > { %559 = vmatpush.bf16.msra.mxu2 %v967_v46  ;;  %573 = vmatpush.bf16.msra.mxu3 %v1031_v50  ;;  %v963_v0 = vor.u32 %v1121_v61, %v960_v62  ;;  %v1024_v2 = vld [vmem:[%s1577_s2 + $0xd8] sm:$0xf0]  ;;  %v950_v5 = vld [vmem:[%s1577_s2 + $0x40] sm:$0xf]  ;;  %v1120_v6 = vld [vmem:[%s1577_s2 + $0x44] sm:$0xf0] }
  0x17   : > { %v294_v3 = vmul.f32 %v1266_v29, %v293_v54  ;;  %v1027_v4 = vor.u32 %v1137_v1, %v1024_v2  ;;  %v1014_v7 = vld [vmem:[%s1577_s2 + $0xc0] sm:$0xf]  ;;  %v1134_v28 = vld [vmem:[%s1577_s2 + $0xb4] sm:$0xf0]  ;;  %v1117_v30 = vld [vmem:[%s1577_s2 + $0x34] sm:$0xf] }
  0x18   : > { %v944_v31 = vld [vmem:[%s1577_s2 + $0x38] sm:$0xf0]  ;;  %v1133_v34 = vld [vmem:[%s1577_s2 + $0xb4] sm:$0xf]  ;;  %v934_v38 = vld [vmem:[%s1577_s2 + $0x20] sm:$0xf] }
  0x19   : > { %587 = vmatpush.bf16.msrb.mxu0 %v971_v51  ;;  %601 = vmatpush.bf16.msrb.mxu1 %v1035_v55  ;;  %v947_v33 = vor.u32 %v1117_v30, %v944_v31  ;;  %v1008_v35 = vld [vmem:[%s1577_s2 + $0xb8] sm:$0xf0]  ;;  %v1116_v39 = vld [vmem:[%s1577_s2 + $0x24] sm:$0xf0]  ;;  %v998_v40 = vld [vmem:[%s1577_s2 + $0xa0] sm:$0xf] }
  0x1a   : > { %560 = vmatpush.bf16.msra.mxu2 %v959_v59  ;;  %574 = vmatpush.bf16.msra.mxu3 %v1023_v63  ;;  %v1011_v37 = vor.u32 %v1133_v34, %v1008_v35  ;;  %v1132_v42 = vld [vmem:[%s1577_s2 + $0xa4] sm:$0xf0]  ;;  %v1115_v43 = vld [vmem:[%s1577_s2 + $0x24] sm:$0xf]  ;;  %v936_v44 = vld [vmem:[%s1577_s2 + $0x28] sm:$0xf0] }
  0x1b   : > { %v999_v46 = vor.u32 %v1132_v42, %v998_v40  ;;  %v939_v47 = vor.u32 %v1115_v43, %v936_v44  ;;  %v1131_v48 = vld [vmem:[%s1577_s2 + $0xa4] sm:$0xf]  ;;  %v1000_v49 = vld [vmem:[%s1577_s2 + $0xa8] sm:$0xf0]  ;;  %v926_v50 = vld [vmem:[%s1577_s2 + $0x10] sm:$0xf] }
  0x1c   : > { %v1003_v52 = vor.u32 %v1131_v48, %v1000_v49  ;;  %v1114_v53 = vld [vmem:[%s1577_s2 + $0x14] sm:$0xf0]  ;;  %v990_v54 = vld [vmem:[%s1577_s2 + $0x90] sm:$0xf]  ;;  %v1113_v58 = vld [vmem:[%s1577_s2 + $0x14] sm:$0xf] }
  0x1d   : > { %588 = vmatpush.bf16.msrb.mxu0 %v963_v0  ;;  %602 = vmatpush.bf16.msrb.mxu1 %v1027_v4  ;;  %v1130_v55 = vld [vmem:[%s1577_s2 + $0x94] sm:$0xf0]  ;;  %v928_v59 = vld [vmem:[%s1577_s2 + $0x18] sm:$0xf0]  ;;  %v1129_v60 = vld [vmem:[%s1577_s2 + $0x94] sm:$0xf]  ;;  %v927_v61 = vor.u32 %v1114_v53, %v926_v50 }
  0x1e   : > { %v991_v62 = vor.u32 %v1130_v55, %v990_v54  ;;  %v931_v63 = vor.u32 %v1113_v58, %v928_v59  ;;  %v992_v0 = vld [vmem:[%s1577_s2 + $0x98] sm:$0xf0]  ;;  %v918_v1 = vld [vmem:[%s1577_s2] sm:$0xf]  ;;  %v1112_v2 = vld [vmem:[%s1577_s2 + $0x4] sm:$0xf0] }
  0x1f   : > { %v995_v4 = vor.u32 %v1129_v60, %v992_v0  ;;  %v346_v44 = vperm.slane %v1237_v8, 1  ;;  %v352_v50 = vperm.slane %v1237_v8, 2 }
  0x91   : > { %v266_v12 = vpop.f32.mrf.mxu0  ;;  %v280_v13 = vpop.f32.mrf.mxu1 }
  0x92   : > { %v1246_v14 = vadd.f32 %v266_v12, %v234_v10  ;;  %v1248_v15 = vadd.f32 %v280_v13, %v235_v11  ;;  %v1119_v12 = vld [vmem:[%s1577_s2 + $0x44] sm:$0xf]  ;;  %v952_v13 = vld [vmem:[%s1577_s2 + $0x48] sm:$0xf0] }
  0x94   : > { %v285_v16 = vadd.f32 %v1248_v15, %v1246_v14  ;;  %v300_v17 = vmul.f32 %v1246_v14, %v1246_v14  ;;  %v301_v18 = vmul.f32 %v1248_v15, %v1248_v15 }
  0x96   : > { %286 = vadd.xlane.f32.xlu0 %v285_v16  ;;  %v304_v19 = vadd.f32 %v301_v18, %v300_v17  ;;  %v955_v17 = vor.u32 %v1119_v12, %v952_v13  ;;  %v1135_v18 = vld [vmem:[%s1577_s2 + $0xc4] sm:$0xf]  ;;  %v984_v13 = vld [vmem:[%s1577_s2 + $0x88] sm:$0xf0] }
  0x97   : > { %v1127_v12 = vld [vmem:[%s1577_s2 + $0x84] sm:$0xf] }
  0x98   : > { %305 = vadd.xlane.f32.xlu1 %v304_v19  ;;  %v1016_v19 = vld [vmem:[%s1577_s2 + $0xc8] sm:$0xf0]  ;;  %589 = vmatpush.bf16.msrb.mxu0 %v955_v17 }
  0x99   : > { %v268_v20 = vpop.f32.mrf.mxu0  ;;  %v282_v21 = vpop.f32.mrf.mxu1 }
  0x9a   : > { %v1256_v22 = vadd.f32 %v268_v20, %v234_v10  ;;  %v1258_v23 = vadd.f32 %v282_v21, %v235_v11  ;;  %v951_v10 = vor.u32 %v1120_v6, %v950_v5  ;;  %v1136_v11 = vld [vmem:[%s1577_s2 + $0xc4] sm:$0xf0]  ;;  %v295_v20 = vadd.f32 %v1266_v29, %v294_v3  ;;  %v982_v5 = vld [vmem:[%s1577_s2 + $0x80] sm:$0xf] }
  0x9b   : > { %v1015_v16 = vor.u32 %v1136_v11, %v1014_v7  ;;  %v1019_v21 = vor.u32 %v1135_v18, %v1016_v19  ;;  %v1128_v6 = vld [vmem:[%s1577_s2 + $0x84] sm:$0xf0]  ;;  %v1111_v7 = vld [vmem:[%s1577_s2 + $0x4] sm:$0xf]  ;;  %v920_v11 = vld [vmem:[%s1577_s2 + $0x8] sm:$0xf0] }
  0x9c   : > { %v288_v24 = vadd.f32 %v1258_v23, %v1256_v22  ;;  %v302_v25 = vmul.f32 %v1256_v22, %v1256_v22  ;;  %v303_v26 = vmul.f32 %v1258_v23, %v1258_v23  ;;  %561 = vmatpush.bf16.msra.mxu2 %v951_v10  ;;  %v1393_v36 = vsel %vm296_vm2, %v1266_v29, %v295_v20 }
  0x9d   : > { %575 = vmatpush.bf16.msra.mxu3 %v1015_v16  ;;  %603 = vmatpush.bf16.msrb.mxu1 %v1019_v21  ;;  %v935_v29 = vor.u32 %v1116_v39, %v934_v38  ;;  %v919_v10 = vor.u32 %v1112_v2, %v918_v1  ;;  %v983_v17 = vor.u32 %v1128_v6, %v982_v5  ;;  %v396_v5 = vperm.slane %v1237_v8, 3 }
  0x9e   : > { %289 = vadd.xlane.f32.xlu0 %v288_v24  ;;  %v307_v27 = vadd.f32 %v303_v26, %v302_v25  ;;  %v942_v24 = vld [vmem:[%s1577_s2 + $0x30] sm:$0xf]  ;;  %v1118_v25 = vld [vmem:[%s1577_s2 + $0x34] sm:$0xf0]  ;;  %590 = vmatpush.bf16.msrb.mxu0 %v947_v33  ;;  %v923_v19 = vor.u32 %v1111_v7, %v920_v11  ;;  %v987_v20 = vor.u32 %v1127_v12, %v984_v13 }
  0x9f   : > { %v1006_v26 = vld [vmem:[%s1577_s2 + $0xb0] sm:$0xf] }
  0xa0   : > { %308 = vadd.xlane.f32.xlu1 %v307_v27  ;;  %v943_v27 = vor.u32 %v1118_v25, %v942_v24  ;;  %v1007_v32 = vor.u32 %v1134_v28, %v1006_v26 }
  0xa1   : > { %604 = vmatpush.bf16.msrb.mxu1 %v1011_v37 }
  0xa2   : > { %562 = vmatpush.bf16.msra.mxu2 %v943_v27  ;;  %576 = vmatpush.bf16.msra.mxu3 %v1007_v32 }
  0xa3   : > { %591 = vmatpush.bf16.msrb.mxu0 %v939_v47  ;;  %v347_v47 = vperm.slane %v1242_v9, 1 }
  0xa5   : > { %605 = vmatpush.bf16.msrb.mxu1 %v1003_v52 }
  0xa6   : > { %563 = vmatpush.bf16.msra.mxu2 %v935_v29  ;;  %577 = vmatpush.bf16.msra.mxu3 %v999_v46 }
  0xa7   : > { %592 = vmatpush.bf16.msrb.mxu0 %v931_v63 }
  0xa9   : > { %606 = vmatpush.bf16.msrb.mxu1 %v995_v4 }
  0xaa   : > { %564 = vmatpush.bf16.msra.mxu2 %v927_v61  ;;  %578 = vmatpush.bf16.msra.mxu3 %v991_v62 }
  0xab   : > { %593 = vmatpush.bf16.msrb.mxu0 %v923_v19 }
  0xad   : > { %607 = vmatpush.bf16.msrb.mxu1 %v987_v20 }
  0xae   : > { %565 = vmatpush.bf16.msra.mxu2 %v919_v10  ;;  %579 = vmatpush.bf16.msra.mxu3 %v983_v17 }
 0x109   : > { %v287_v41 = vpop.xlane.xlu0 %286 }
 0x10a   : > { %v1414_v45 = vmul.f32 %v1393_v36, %v287_v41 }
 0x10b   : > { %v306_v51 = vpop.xlane.xlu1 %305 }
 0x10c   : > { %v310_v56 = vmul.f32 %v306_v51, %v1393_v36  ;;  %v312_v57 = vmul.f32 %v1414_v45, %v1414_v45  ;;  %v338_v41 = vsub.f32 %v1246_v14, %v1414_v45  ;;  %v339_v29 = vsub.f32 %v1248_v15, %v1414_v45 }
 0x10d   : > { %v353_v51 = vperm.slane %v1242_v9, 2 }
 0x10e   : > { %v314_v3 = vsub.f32 %v310_v56, %v312_v57 }
 0x110   : > { %v316_v16 = vadd.f32 1e-05, %v314_v3 }
 0x111   : > { %v290_v18 = vpop.xlane.xlu0 %289 }
 0x112   : > { %1170 = vrsqrt.f32 %v316_v16  ;;  %v299_v21 = vmul.f32 %v1393_v36, %v290_v18  ;;  %vm324_vm4 = vweird.f32 %v316_v16 }
 0x113   : > { %v309_v24 = vpop.xlane.xlu1 %308 }
 0x114   : > { %v311_v25 = vmul.f32 %v309_v24, %v1393_v36  ;;  %v313_v26 = vmul.f32 %v299_v21, %v299_v21  ;;  %v340_v14 = vsub.f32 %v1256_v22, %v299_v21  ;;  %v341_v52 = vsub.f32 %v1258_v23, %v299_v21 }
 0x115   : > { %v397_v23 = vperm.slane %v1242_v9, 3 }
 0x116   : > { %v315_v27 = vsub.f32 %v311_v25, %v313_v26 }
 0x118   : > { %v1171_v28 = vpop.eup %1170  ;;  %v317_v30 = vadd.f32 1e-05, %v315_v27 }
 0x119   : > { %v319_v31 = vmul.f32 %v1171_v28, %v316_v16  ;;  %vm325_vm3 = vweird.f32 %v1171_v28 }
 0x11a   : > { %1172 = vrsqrt.f32 %v317_v30  ;;  %vm326_vm5 = vmor %vm324_vm4, %vm325_vm3  ;;  %vm334_vm7 = vweird.f32 %v317_v30 }
 0x11b   : > { %v320_v32 = vmul.f32 %v1171_v28, %v319_v31 }
 0x11d   : > { %v321_v33 = vmul.f32 0.5, %v320_v32 }
 0x11f   : > { %v322_v34 = vsub.f32 1.5, %v321_v33 }
 0x120   : > { %v1173_v35 = vpop.eup %1172 }
 0x121   : > { %v323_v37 = vmul.f32 %v1171_v28, %v322_v34  ;;  %v329_v38 = vmul.f32 %v1173_v35, %v317_v30  ;;  %vm335_vm6 = vweird.f32 %v1173_v35 }
 0x122   : > { %vm336_vm8 = vmor %vm334_vm7, %vm335_vm6 }
 0x123   : > { %v330_v39 = vmul.f32 %v1173_v35, %v329_v38  ;;  %v327_v40 = vsel %vm326_vm5, %v1171_v28, %v323_v37  ;;  %v1158_v37 = vld [vmem:[%s1578_s3 + $0x78] sm:$0xff]  ;;  %v1149_v38 = vld [vmem:[%s1578_s3 + $0x30] sm:$0xff] }
 0x124   : > { %v342_v43 = vmul.f32 %v338_v41, %v327_v40  ;;  %v343_v46 = vmul.f32 %v339_v29, %v327_v40  ;;  %829 = vmatpush.bf16.msrb.mxu3 %v1158_v37  ;;  %v1148_v40 = vld [vmem:[%s1578_s3 + $0x28] sm:$0xff]  ;;  %v1147_v29 = vld [vmem:[%s1578_s3 + $0x20] sm:$0xff] }
 0x125   : > { %v331_v42 = vmul.f32 0.5, %v330_v39  ;;  %v1157_v39 = vld [vmem:[%s1578_s3 + $0x70] sm:$0xff]  ;;  %v1156_v41 = vld [vmem:[%s1578_s3 + $0x68] sm:$0xff] }
 0x126   : > { %v348_v15 = vmul.f32 %v346_v44, %v342_v43  ;;  %v349_v45 = vmul.f32 %v347_v47, %v343_v46  ;;  %v1146_v43 = vld [vmem:[%s1578_s3 + $0x18] sm:$0xff] }
 0x127   : > { %v332_v48 = vsub.f32 1.5, %v331_v42  ;;  %v1155_v42 = vld [vmem:[%s1578_s3 + $0x60] sm:$0xff] }
 0x128   : > { %v354_v57 = vadd.f32 %v352_v50, %v348_v15  ;;  %v355_v59 = vadd.f32 %v353_v51, %v349_v45  ;;  %830 = vmatpush.bf16.msrb.mxu3 %v1157_v39  ;;  %v1152_v15 = vld [vmem:[%s1578_s3 + $0x48] sm:$0xff] }
 0x129   : > { %v333_v49 = vmul.f32 %v1173_v35, %v332_v48  ;;  %v1145_v48 = vld [vmem:[%s1578_s3 + $0x10] sm:$0xff] }
 0x12a   : > { %v358_v62 = vmax.f32 %v354_v57, 0.0  ;;  %v359_v0 = vmax.f32 %v355_v59, 0.0 }
 0x12b   : > { %v337_v53 = vsel %vm336_vm8, %v1173_v35, %v333_v49  ;;  %v1150_v35 = vld [vmem:[%s1578_s3 + $0x38] sm:$0xff]  ;;  %v1153_v49 = vld [vmem:[%s1578_s3 + $0x50] sm:$0xff] }
 0x12c   : > { %v344_v54 = vmul.f32 %v340_v14, %v337_v53  ;;  %v345_v55 = vmul.f32 %v341_v52, %v337_v53  ;;  %815 = vmatpush.bf16.msrb.mxu2 %v1150_v35  ;;  %831 = vmatpush.bf16.msrb.mxu3 %v1156_v41  ;;  %v1144_v52 = vld [vmem:[%s1578_s3 + $0x8] sm:$0xff] }
 0x12e   : > { %v350_v56 = vmul.f32 %v346_v44, %v344_v54  ;;  %v351_v58 = vmul.f32 %v347_v47, %v345_v55  ;;  %v1154_v44 = vld [vmem:[%s1578_s3 + $0x58] sm:$0xff]  ;;  %v1143_v54 = vld [vmem:[%s1578_s3] sm:$0xff] }
 0x130   : > { %v356_v60 = vadd.f32 %v352_v50, %v350_v56  ;;  %v357_v61 = vadd.f32 %v353_v51, %v351_v58  ;;  %816 = vmatpush.bf16.msrb.mxu2 %v1149_v38  ;;  %832 = vmatpush.bf16.msrb.mxu3 %v1155_v42  ;;  %v1151_v56 = vld [vmem:[%s1578_s3 + $0x40] sm:$0xff] }
 0x132   : > { %v360_v63 = vmax.f32 %v356_v60, 0.0  ;;  %v361_v1 = vmax.f32 %v357_v61, 0.0 }
 0x134   : > { %v362_v2 = vpack.c.bf16 %v360_v63, %v358_v62  ;;  %v363_v22 = vpack.c.bf16 %v361_v1, %v359_v0  ;;  %817 = vmatpush.bf16.msrb.mxu2 %v1148_v40  ;;  %833 = vmatpush.bf16.msrb.mxu3 %v1154_v44 }
 0x136   : > { %566 = vmatmul.bf16.vlgmr.msra.gmra.mxu2 %v362_v2  ;;  %580 = vmatmul.bf16.vlgmr.msra.gmra.mxu3 %v363_v22 }
 0x137   : > { %594 = vmatmul.bf16.vlgmr.msrb.gmra.mxu0 %v362_v2  ;;  %608 = vmatmul.bf16.vlgmr.msrb.gmra.mxu1 %v363_v22 }
 0x138   : > { %818 = vmatpush.bf16.msrb.mxu2 %v1147_v29  ;;  %834 = vmatpush.bf16.msrb.mxu3 %v1153_v49 }
 0x13c   : > { %819 = vmatpush.bf16.msrb.mxu2 %v1146_v43  ;;  %835 = vmatpush.bf16.msrb.mxu3 %v1152_v15 }
 0x140   : > { %820 = vmatpush.bf16.msrb.mxu2 %v1145_v48  ;;  %836 = vmatpush.bf16.msrb.mxu3 %v1151_v56 }
 0x144   : > { %821 = vmatpush.bf16.msrb.mxu2 %v1144_v52 }
 0x148   : > { %822 = vmatpush.bf16.msrb.mxu2 %v1143_v54 }
 0x1b4   : > { %v595_v3 = vpop.f32.mrf.mxu0  ;;  %v609_v6 = vpop.f32.mrf.mxu1 }
 0x1b5   : > { %v596_v4 = vadd.f32 %v595_v3, %v397_v23 }
 0x1b7   : > { %v1487_v11 = vadd.f32 %v609_v6, %v596_v4 }
 0x1b9   : > { %v567_v7 = vpop.f32.mrf.mxu2  ;;  %v581_v10 = vpop.f32.mrf.mxu3  ;;  %v623_v20 = vmul.f32 %v1487_v11, %v1487_v11 }
 0x1ba   : > { %v568_v12 = vadd.f32 %v567_v7, %v396_v5 }
 0x1bc   : > { %v1489_v13 = vadd.f32 %v581_v10, %v568_v12  ;;  %v597_v16 = vpop.f32.mrf.mxu0  ;;  %v611_v24 = vpop.f32.mrf.mxu1 }
 0x1bd   : > { %v598_v17 = vadd.f32 %v597_v16, %v397_v23  ;;  %v668_v16 = vperm.slane %v1237_v8, 4 }
 0x1be   : > { %v614_v18 = vadd.f32 %v1487_v11, %v1489_v13  ;;  %v622_v19 = vmul.f32 %v1489_v13, %v1489_v13 }
 0x1bf   : > { %v1497_v26 = vadd.f32 %v611_v24, %v598_v17  ;;  %v675_v24 = vperm.slane %v1242_v9, 5 }
 0x1c0   : > { %615 = vadd.xlane.f32.xlu2 %v614_v18  ;;  %v626_v21 = vadd.f32 %v623_v20, %v622_v19  ;;  %v669_v18 = vperm.slane %v1242_v9, 4 }
 0x1c1   : > { %v569_v25 = vpop.f32.mrf.mxu2  ;;  %v583_v28 = vpop.f32.mrf.mxu3  ;;  %v625_v33 = vmul.f32 %v1497_v26, %v1497_v26 }
 0x1c2   : > { %v570_v27 = vadd.f32 %v569_v25, %v396_v5  ;;  %627 = vadd.xlane.f32.xlu0 %v626_v21  ;;  %v674_v21 = vperm.slane %v1237_v8, 5 }
 0x1c4   : > { %v1499_v30 = vadd.f32 %v583_v28, %v570_v27 }
 0x1c6   : > { %v617_v31 = vadd.f32 %v1497_v26, %v1499_v30  ;;  %v624_v32 = vmul.f32 %v1499_v30, %v1499_v30 }
 0x1c8   : > { %618 = vadd.xlane.f32.xlu2 %v617_v31  ;;  %v629_v34 = vadd.f32 %v625_v33, %v624_v32 }
 0x1ca   : > { %630 = vadd.xlane.f32.xlu1 %v629_v34 }
 0x233   : > { %v616_v46 = vpop.xlane.xlu2 %615 }
 0x234   : > { %v620_v47 = vmul.f32 %v616_v46, %v1393_v36 }
 0x235   : > { %v628_v50 = vpop.xlane.xlu0 %627 }
 0x236   : > { %v632_v51 = vmul.f32 %v628_v50, %v1393_v36  ;;  %v634_v14 = vmul.f32 %v620_v47, %v620_v47  ;;  %v661_v7 = vsub.f32 %v1487_v11, %v620_v47 }
 0x238   : > { %v636_v45 = vsub.f32 %v632_v51, %v634_v14 }
 0x23a   : > { %v638_v53 = vadd.f32 1e-05, %v636_v45 }
 0x23b   : > { %v619_v55 = vpop.xlane.xlu2 %618 }
 0x23c   : > { %1174 = vrsqrt.f32 %v638_v53  ;;  %v621_v57 = vmul.f32 %v619_v55, %v1393_v36  ;;  %vm646_vm10 = vweird.f32 %v638_v53 }
 0x23d   : > { %v631_v58 = vpop.xlane.xlu1 %630 }
 0x23e   : > { %v633_v59 = vmul.f32 %v631_v58, %v1393_v36  ;;  %v635_v60 = vmul.f32 %v621_v57, %v621_v57  ;;  %v660_v36 = vsub.f32 %v1489_v13, %v620_v47  ;;  %v662_v25 = vsub.f32 %v1499_v30, %v621_v57 }
 0x23f   : > { %v663_v13 = vsub.f32 %v1497_v26, %v621_v57  ;;  %v718_v26 = vperm.slane %v1237_v8, 6 }
 0x240   : > { %v637_v61 = vsub.f32 %v633_v59, %v635_v60 }
 0x242   : > { %v1175_v62 = vpop.eup %1174  ;;  %v639_v63 = vadd.f32 1e-05, %v637_v61 }
 0x243   : > { %v641_v0 = vmul.f32 %v1175_v62, %v638_v53  ;;  %vm647_vm9 = vweird.f32 %v1175_v62 }
 0x244   : > { %1176 = vrsqrt.f32 %v639_v63  ;;  %vm648_vm11 = vmor %vm646_vm10, %vm647_vm9  ;;  %vm656_vm13 = vweird.f32 %v639_v63 }
 0x245   : > { %v642_v1 = vmul.f32 %v1175_v62, %v641_v0 }
 0x247   : > { %v643_v2 = vmul.f32 0.5, %v642_v1 }
 0x249   : > { %v644_v22 = vsub.f32 1.5, %v643_v2 }
 0x24a   : > { %v1177_v23 = vpop.eup %1176 }
 0x24b   : > { %v645_v3 = vmul.f32 %v1175_v62, %v644_v22  ;;  %v651_v4 = vmul.f32 %v1177_v23, %v639_v63  ;;  %vm657_vm12 = vweird.f32 %v1177_v23 }
 0x24c   : > { %vm658_vm14 = vmor %vm656_vm13, %vm657_vm12 }
 0x24d   : > { %v649_v5 = vsel %vm648_vm11, %v1175_v62, %v645_v3  ;;  %v652_v6 = vmul.f32 %v1177_v23, %v651_v4 }
 0x24e   : > { %v664_v12 = vmul.f32 %v660_v36, %v649_v5  ;;  %v665_v17 = vmul.f32 %v661_v7, %v649_v5 }
 0x24f   : > { %v653_v10 = vmul.f32 0.5, %v652_v6 }
 0x250   : > { %v670_v11 = vmul.f32 %v668_v16, %v664_v12  ;;  %v671_v27 = vmul.f32 %v669_v18, %v665_v17 }
 0x251   : > { %v654_v19 = vsub.f32 1.5, %v653_v10 }
 0x252   : > { %v676_v34 = vadd.f32 %v674_v21, %v670_v11  ;;  %v677_v37 = vadd.f32 %v675_v24, %v671_v27 }
 0x253   : > { %v655_v20 = vmul.f32 %v1177_v23, %v654_v19 }
 0x254   : > { %v680_v40 = vmax.f32 %v676_v34, 0.0  ;;  %v681_v9 = vmax.f32 %v677_v37, 0.0 }
 0x255   : > { %v659_v28 = vsel %vm658_vm14, %v1177_v23, %v655_v20 }
 0x256   : > { %v666_v31 = vmul.f32 %v662_v25, %v659_v28  ;;  %v667_v32 = vmul.f32 %v663_v13, %v659_v28 }
 0x258   : > { %v672_v33 = vmul.f32 %v668_v16, %v666_v31  ;;  %v673_v35 = vmul.f32 %v669_v18, %v667_v32 }
 0x25a   : > { %v678_v38 = vadd.f32 %v674_v21, %v672_v33  ;;  %v679_v39 = vadd.f32 %v675_v24, %v673_v35 }
 0x25c   : > { %v682_v41 = vmax.f32 %v678_v38, 0.0  ;;  %v683_v29 = vmax.f32 %v679_v39, 0.0 }
 0x25e   : > { %v684_v30 = vpack.c.bf16 %v682_v41, %v680_v40  ;;  %v685_v42 = vpack.c.bf16 %v683_v29, %v681_v9 }
 0x260   : > { %823 = vmatmul.bf16.vlgmr.msrb.gmra.mxu2 %v684_v30  ;;  %837 = vmatmul.bf16.vlgmr.msrb.gmra.mxu3 %v685_v42 }
 0x2e3   : > { %v824_v43 = vpop.f32.mrf.mxu2  ;;  %v838_v44 = vpop.f32.mrf.mxu3 }
 0x2e4   : > { %v825_v46 = vadd.f32 %v824_v43, %v718_v26 }
 0x2e6   : > { %v839_v47 = vadd.f32 %v838_v44, %v825_v46 }
 0x2e8   : > { %843 = vst [vmem:[%s226_s8] sm:$0xff] %v839_v47 }
 0x2eb   : > { %v826_v48 = vpop.f32.mrf.mxu2  ;;  %v840_v50 = vpop.f32.mrf.mxu3 }
 0x2ec   : > { %v827_v49 = vadd.f32 %v826_v48, %v718_v26 }
 0x2ee   : > { %v841_v51 = vadd.f32 %v840_v50, %v827_v49 }
 0x2f0   : > { %844 = vst [vmem:[%s226_s8 + $0x8] sm:$0xff] %v841_v51 }
 0x2f1 PF: > { %s15_s18 = sadd.s32 1, %s1184_s18  }
 0x2f2   : > { %p12_p4 = scmp.ge.s32.totalorder %s15_s18, 4  }
 0x2f4   :  { %14 = sbr.rel (!%p12_p4) target bundleno = 1 (0x1), region = 70 }

</bundles_post_ra>
